<compile_context>
chip_gen: v5e
topology: v5e:2x2
jax: 0.10.0
libtpu: 0.0.40
codegen_flags: <defaults>
</compile_context>

<pallas_src>
import jax
import jax.numpy as jnp
from jax.experimental import pallas as pl
from jax.experimental.pallas import tpu as pltpu


# --------------------------------------------------------------------------
# Kernels
# --------------------------------------------------------------------------
def _attend_and_apply(xh, xl, watt, out_ref):
    """Shared tail: pooled attention (tiny, f32) + native-dtype weighted sum."""
    C = xh.shape[0]
    inv_hw = 1.0 / xh.shape[1]

    # Global average pool of (xh + xl) without materializing the sum; f32
    # accumulation without upcasting the whole (C, HW) block.
    g = (jnp.sum(xh, axis=-1, keepdims=True, dtype=jnp.float32)
         + jnp.sum(xl, axis=-1, keepdims=True, dtype=jnp.float32)) * inv_hw   # (C, 1)

    # Folded 1x1-conv chain: single (2C, C) @ (C, 1) matmul, channels on sublanes.
    s = jnp.dot(watt, g.astype(watt.dtype), preferred_element_type=jnp.float32)  # (2C, 1)
    s1 = s[:C]
    s2 = s[C:]

    # 2-way softmax (torch dim=2); denominator on the EUP (approx reciprocal).
    m = jnp.maximum(s1, s2)
    e1 = jnp.exp(s1 - m)
    e2 = jnp.exp(s2 - m)
    inv = pl.reciprocal(e1 + e2, approx=True)
    a = (e1 * inv).astype(xh.dtype)       # only the tiny (C,1) att is cast down
    b = (e2 * inv).astype(xh.dtype)

    # Weighted sum in the native dtype (bf16 stays bf16 on the VPU).
    out_ref[0] = (a * xh + b * xl).astype(out_ref.dtype)


def _csf_fused_kernel(xh_ref, xl_ref, watt_ref, out_ref):
    """One batch element per grid step: pool + attention + weighted sum."""
    _attend_and_apply(xh_ref[0], xl_ref[0], watt_ref[...], out_ref)


def _csf_fused_resize_kernel(xh_ref, xl_ref, r_ref, watt_ref, out_ref):
    """Fused path with the bilinear upsample of x_l folded into the kernel.

    The (align_corners=False) bilinear resize is a fixed linear map, so the
    small x_l block is upsampled with a single (C, HlWl) @ (HlWl, HW) matmul
    (Kronecker of the per-axis lerp matrices); x_l is read from HBM at its
    small size, saving a full-size HBM write + read vs. a separate resize.
    """
    xh = xh_ref[0]                                              # (C, HW)
    xl = jnp.dot(xl_ref[0], r_ref[...],
                 preferred_element_type=xh.dtype)               # (C, HW), native dtype
    _attend_and_apply(xh, xl, watt_ref[...], out_ref)


def _csf_stream_kernel(att_ref, xh_ref, xl_ref, out_ref):
    """Streaming pass: out = a * xh + b * xl on a (tc, thw) lane-dense tile."""
    att = att_ref[0]                                            # (tc, 2), f32
    a = att[:, 0:1].astype(out_ref.dtype)
    b = att[:, 1:2].astype(out_ref.dtype)
    out_ref[0] = (a * xh_ref[0] + b * xl_ref[0]).astype(out_ref.dtype)


# --------------------------------------------------------------------------
# Wrapper helpers
# --------------------------------------------------------------------------
def _tpu_vmem_capacity_bytes():
    try:
        return int(pltpu.get_tpu_info().vmem_capacity_bytes)
    except Exception:
        return 128 * 1024 * 1024


def _fold_weights(params):
    """Pre-compose layer1 + SE1/SE2 into one (2C, C) matrix (exact: no bias/act)."""
    w1, w2, wse1, wse2 = (p.astype(jnp.float32) for p in params)
    core = w2 @ w1                                   # (C, C1) @ (C1, C) -> (C, C)
    return jnp.concatenate([wse1 @ core, wse2 @ core], axis=0)     # (2C, C)


def _bilinear_matrix(out_size, in_size):
    """Per-axis lerp matrix matching torch F.interpolate(bilinear, align_corners=False)."""
    if out_size == in_size:
        return jnp.eye(out_size, dtype=jnp.float32)
    dst = jnp.arange(out_size, dtype=jnp.float32)
    src = jnp.clip((dst + 0.5) * (in_size / out_size) - 0.5, 0.0, in_size - 1)
    lo = jnp.floor(src).astype(jnp.int32)
    hi = jnp.minimum(lo + 1, in_size - 1)
    w_hi = src - lo.astype(jnp.float32)
    rows = jnp.arange(out_size)
    m = jnp.zeros((out_size, in_size), jnp.float32)
    m = m.at[rows, lo].add(1.0 - w_hi)
    m = m.at[rows, hi].add(w_hi)
    return m


def _pick_stream_tiles(C, HW, per_elem_bytes, budget):
    """Pick (tc, thw) obeying the (8,128)/full-dim rule within the VMEM budget."""
    if HW <= 256:
        thw = HW                                      # full spatial extent (legal block)
    else:
        # Largest multiple of 128 <= min(HW, 1024/2048), preferring a divisor of
        # HW so the last tile column is not a masked partial store.
        max_thw = min((HW // 128) * 128, 2048 if budget >= (80 << 20) else 1024)
        thw = max_thw
        t = max_thw
        while t >= 128:
            if HW % t == 0:
                thw = t
                break
            t -= 128
    tc = C
    while tc > 8 and tc * thw * per_elem_bytes > budget:
        tc = max(8, ((tc // 2) // 8) * 8)
    return tc, thw


# --------------------------------------------------------------------------
# Public forward
# --------------------------------------------------------------------------
def csf_block(x_h, x_l, params, *, force_streaming=False):
    """params = (w1: (C1, C), w2: (C, C1), wse1: (C, C), wse2: (C, C))."""
    B, C, H, W = x_h.shape
    dtype = x_h.dtype
    in_bytes = jnp.dtype(dtype).itemsize
    HW = H * W

    vmem_cap = _tpu_vmem_capacity_bytes()
    budget = min(vmem_cap * 3 // 4, 96 * 1024 * 1024)
    small_vmem_chip = vmem_cap <= 64 * 1024 * 1024        # v7x-class (2 TCs, 64 MiB VMEM)

    watt = _fold_weights(params)                           # (2C, C) f32
    if dtype == jnp.bfloat16:
        watt = watt.astype(jnp.bfloat16)                   # halve resident weight bytes
    watt_bytes = int(watt.size) * jnp.dtype(watt.dtype).itemsize

    # ---- bilinear resize handling (torch align_corners=False semantics) ----
    resize_needed = x_l.shape != x_h.shape
    fuse_resize = False
    rh = rw = None
    HlWl = 0
    if resize_needed:
        _, _, Hl, Wl = x_l.shape
        rh = _bilinear_matrix(H, Hl)                       # (H, Hl)
        rw = _bilinear_matrix(W, Wl)                       # (W, Wl)
        HlWl = Hl * Wl
        # Fuse the upsample into the kernel when the Kronecker lerp matrix is small.
        fuse_resize = HW * HlWl * in_bytes <= 4 * 1024 * 1024
        if not fuse_resize:
            # TODO(synk): gather-based fused resize (scalar-prefetched row/col
            # indices + lerp weights) for large spatial extents to avoid this
            # extra full-size HBM pass.
            x_l = jnp.einsum("hk,bckl,wl->bchw", rh, x_l.astype(jnp.float32), rw)
    x_l = x_l.astype(dtype)
    xh = x_h.reshape(B, C, HW)

    # ---- fused-path VMEM footprint (double-buffered IO + in-kernel temps) ----
    per_elem_fused = 8 * in_bytes            # 3 (C,HW) blocks x2 buffers + ~2 temporaries
    fused_footprint = C * HW * per_elem_fused + 2 * watt_bytes
    if fuse_resize:
        fused_footprint += (2 * C * HlWl + 2 * HlWl * HW + C * HW) * in_bytes

    use_fused = (not force_streaming) and fused_footprint <= budget
    # v7x-class: with grid=(B,) there is no DMA/compute pipelining and one of the
    # two TensorCores idles; prefer the multi-axis streaming grid at B==1 when
    # there is enough work to amortize the extra pooling pass.
    if (use_fused and small_vmem_chip and B == 1 and not fuse_resize
            and C * HW * in_bytes >= 4 * 1024 * 1024):
        use_fused = False
    if not use_fused and fuse_resize:
        # Streaming path does not fuse the resize -> upsample once in XLA.
        x_l = jnp.einsum("hk,bckl,wl->bchw", rh,
                         x_l.astype(jnp.float32), rw).astype(dtype)
        fuse_resize = False

    if use_fused:
        # ---------------- fused single-pass path ----------------
        if fuse_resize:
            r_full = jnp.kron(rh, rw).T.astype(dtype)      # (HlWl, HW)
            xl_small = x_l.reshape(B, C, HlWl)
            out = pl.pallas_call(
                _csf_fused_resize_kernel,
                out_shape=jax.ShapeDtypeStruct((B, C, HW), dtype),
                grid_spec=pltpu.PrefetchScalarGridSpec(
                    num_scalar_prefetch=0,
                    grid=(B,),
                    in_specs=[
                        pl.BlockSpec((1, C, HW), lambda b: (b, 0, 0)),
                        pl.BlockSpec((1, C, HlWl), lambda b: (b, 0, 0)),
                        pl.BlockSpec((HlWl, HW), lambda b: (0, 0)),
                        pl.BlockSpec((2 * C, C), lambda b: (0, 0)),
                    ],
                    out_specs=pl.BlockSpec((1, C, HW), lambda b: (b, 0, 0)),
                ),
                compiler_params=pltpu.CompilerParams(
                    dimension_semantics=("parallel",),
                    vmem_limit_bytes=budget,
                ),
            )(xh, xl_small, r_full, watt)
        else:
            xl = x_l.reshape(B, C, HW)
            out = pl.pallas_call(
                _csf_fused_kernel,
                out_shape=jax.ShapeDtypeStruct((B, C, HW), dtype),
                grid_spec=pltpu.PrefetchScalarGridSpec(
                    num_scalar_prefetch=0,
                    grid=(B,),
                    in_specs=[
                        pl.BlockSpec((1, C, HW), lambda b: (b, 0, 0)),
                        pl.BlockSpec((1, C, HW), lambda b: (b, 0, 0)),
                        pl.BlockSpec((2 * C, C), lambda b: (0, 0)),
                    ],
                    out_specs=pl.BlockSpec((1, C, HW), lambda b: (b, 0, 0)),
                ),
                compiler_params=pltpu.CompilerParams(
                    dimension_semantics=("parallel",),
                    vmem_limit_bytes=budget,
                ),
            )(xh, xl, watt)
        return out.reshape(B, C, H, W)

    # ---------------- two-pass streaming path ----------------
    xl = x_l.reshape(B, C, HW)
    # Pass 1: pooled attention — microscopic, plain XLA (exact softmax).
    g = (jnp.mean(xh, axis=-1, dtype=jnp.float32)
         + jnp.mean(xl, axis=-1, dtype=jnp.float32))                 # (B, C)
    s = g @ watt.astype(jnp.float32).T                                # (B, 2C)
    s1, s2 = s[:, :C], s[:, C:]
    m = jnp.maximum(s1, s2)
    e1 = jnp.exp(s1 - m)
    e2 = jnp.exp(s2 - m)
    inv = 1.0 / (e1 + e2)
    att = jnp.stack([e1 * inv, e2 * inv], axis=-1)                    # (B, C, 2) f32

    # Pass 2: lane-dense streaming weighted sum at the HBM roofline.
    per_elem_stream = 8 * in_bytes
    tc, thw = _pick_stream_tiles(C, HW, per_elem_stream, budget)
    grid = (B, pl.cdiv(C, tc), pl.cdiv(HW, thw))
    out = pl.pallas_call(
        _csf_stream_kernel,
        out_shape=jax.ShapeDtypeStruct((B, C, HW), dtype),
        grid_spec=pltpu.PrefetchScalarGridSpec(
            num_scalar_prefetch=0,
            grid=grid,
            in_specs=[
                pl.BlockSpec((1, tc, 2), lambda b, ci, hi: (b, ci, 0)),
                pl.BlockSpec((1, tc, thw), lambda b, ci, hi: (b, ci, hi)),
                pl.BlockSpec((1, tc, thw), lambda b, ci, hi: (b, ci, hi)),
            ],
            out_specs=pl.BlockSpec((1, tc, thw), lambda b, ci, hi: (b, ci, hi)),
        ),
        compiler_params=pltpu.CompilerParams(
            dimension_semantics=("parallel", "parallel", "parallel"),
            vmem_limit_bytes=budget,
        ),
    )(att, xh, xl)
    return out.reshape(B, C, H, W)


# --------------------------------------------------------------------------
# Params / reference
# --------------------------------------------------------------------------
def init_params(key, in_channels, channels_1):
    """Deterministic Conv2d-style init (uniform +-1/sqrt(fan_in)), 1x1 kernels."""
    def conv_w(k, out_c, in_c):
        bound = 1.0 / (in_c ** 0.5)
        return jax.random.uniform(k, (out_c, in_c), jnp.float32, -bound, bound)

    k1, k2, k3, k4 = jax.random.split(key, 4)
    w1 = conv_w(k1, channels_1, in_channels)      # layer1 conv #1
    w2 = conv_w(k2, in_channels, channels_1)      # layer1 conv #2
    wse1 = conv_w(k3, in_channels, in_channels)   # SE1
    wse2 = conv_w(k4, in_channels, in_channels)   # SE2
    return w1, w2, wse1, wse2


def ref_forward(x_h, x_l, params):
    """Plain-JAX reference mirroring the PyTorch forward (same-size inputs)."""
    w1, w2, wse1, wse2 = params
    x_f = x_h + x_l
    g = jnp.mean(x_f, axis=(2, 3))                # (B, C) global avg pool
    h = g @ w1.T @ w2.T
    s1 = h @ wse1.T
    s2 = h @ wse2.T
    att = jax.nn.softmax(jnp.stack([s1, s2], axis=2), axis=2)
    a = att[:, :, 0][:, :, None, None]
    b = att[:, :, 1][:, :, None, None]
    return a * x_h + b * x_l


if __name__ == "__main__":
    B, C, H, W = 2, 4, 16, 16       # in_channels = 4
    C1 = 8                          # channels_1 = 8

    key = jax.random.PRNGKey(0)
    kx1, kx2, kx3, kp = jax.random.split(key, 4)
    x_h = jax.random.normal(kx1, (B, C, H, W), jnp.float32)
    x_l = jax.random.normal(kx2, (B, C, H, W), jnp.float32)
    x_l_small = jax.random.normal(kx3, (B, C, H // 2, W // 2), jnp.float32)
    params = init_params(kp, C, C1)

    ref = ref_forward(x_h, x_l, params)

    # 1) Fused single-pass path (fits VMEM at these shapes).
    out = jax.block_until_ready(csf_block(x_h, x_l, params))
    assert out.shape == (B, C, H, W) and out.dtype == x_h.dtype
    # approx=True EUP reciprocal in the 2-way softmax -> slightly relaxed tol.
    assert jnp.allclose(out, ref, atol=5e-3, rtol=5e-3), "fused path mismatch"

    # 2) Two-pass streaming path (auto-selected when C*HW overflows VMEM).
    out_s = jax.block_until_ready(csf_block(x_h, x_l, params, force_streaming=True))
    assert jnp.allclose(out_s, ref, atol=1e-5, rtol=1e-5), "streaming path mismatch"

    # 3) Mismatched resolution: bilinear upsample of x_l fused into the kernel.
    rh = _bilinear_matrix(H, H // 2)
    rw = _bilinear_matrix(W, W // 2)
    x_l_up = jnp.einsum("hk,bckl,wl->bchw", rh, x_l_small, rw)
    ref_r = ref_forward(x_h, x_l_up, params)
    out_r = jax.block_until_ready(csf_block(x_h, x_l_small, params))
    assert out_r.shape == (B, C, H, W)
    assert jnp.allclose(out_r, ref_r, atol=5e-3, rtol=5e-3), "resize-fused path mismatch"

    # 4) Mismatched resolution via the streaming fallback (XLA upsample).
    out_rs = jax.block_until_ready(
        csf_block(x_h, x_l_small, params, force_streaming=True))
    assert jnp.allclose(out_rs, ref_r, atol=1e-5, rtol=1e-5), "resize+streaming mismatch"

    # 5) bf16 inputs stay bf16 end-to-end on the fused path (native-dtype apply).
    xh_bf = x_h.astype(jnp.bfloat16)
    xl_bf = x_l.astype(jnp.bfloat16)
    ref_bf = ref_forward(xh_bf.astype(jnp.float32), xl_bf.astype(jnp.float32), params)
    out_bf = jax.block_until_ready(csf_block(xh_bf, xl_bf, params))
    assert out_bf.dtype == jnp.bfloat16
    assert jnp.allclose(out_bf.astype(jnp.float32), ref_bf, atol=3e-2, rtol=3e-2), \
        "bf16 fused path mismatch"

    print("KERNEL_OK")
</pallas_src>

<mosaic_0001>
module attributes {stable_mosaic.version = 11 : i64} {
  func.func @_csf_fused_kernel(%arg0: i32, %arg1: memref<1x4x256xf32, #tpu.memory_space<vmem>>, %arg2: memref<1x4x256xf32, #tpu.memory_space<vmem>>, %arg3: memref<8x4xf32, #tpu.memory_space<vmem>>, %arg4: memref<1x4x256xf32, #tpu.memory_space<vmem>>) attributes {dimension_semantics = [#tpu.dimension_semantics<parallel>], iteration_bounds = array<i64: 2>, scalar_prefetch = 0 : i64, scratch_operands = 0 : i64, tpu.core_type = #tpu.core_type<tc>, window_params = [{transform_indices = @transform_0, window_bounds = array<i64: 1, 4, 256>}, {transform_indices = @transform_1, window_bounds = array<i64: 1, 4, 256>}, {pipeline_mode = #tpu.pipeline_mode<synchronous>, transform_indices = @transform_2, window_bounds = array<i64: 8, 4>}, {transform_indices = @transform_3, window_bounds = array<i64: 1, 4, 256>}]} {
    %c0 = arith.constant 0 : index
    %c0_0 = arith.constant 0 : index
    %c0_1 = arith.constant 0 : index
    %0 = vector.load %arg1[%c0, %c0_0, %c0_1] : memref<1x4x256xf32, #tpu.memory_space<vmem>>, vector<1x4x256xf32>
    %1 = vector.shape_cast %0 : vector<1x4x256xf32> to vector<4x256xf32>
    %c0_2 = arith.constant 0 : index
    %c0_3 = arith.constant 0 : index
    %c0_4 = arith.constant 0 : index
    %2 = vector.load %arg2[%c0_2, %c0_3, %c0_4] : memref<1x4x256xf32, #tpu.memory_space<vmem>>, vector<1x4x256xf32>
    %3 = vector.shape_cast %2 : vector<1x4x256xf32> to vector<4x256xf32>
    %c0_5 = arith.constant 0 : index
    %c0_6 = arith.constant 0 : index
    %4 = vector.load %arg3[%c0_5, %c0_6] : memref<8x4xf32, #tpu.memory_space<vmem>>, vector<8x4xf32>
    %cst = arith.constant dense<0.000000e+00> : vector<4xf32>
    %5 = vector.multi_reduction <add>, %1, %cst [1] : vector<4x256xf32> to vector<4xf32>
    %6 = vector.shape_cast %5 : vector<4xf32> to vector<4x1xf32>
    %cst_7 = arith.constant dense<0.000000e+00> : vector<4xf32>
    %7 = vector.multi_reduction <add>, %3, %cst_7 [1] : vector<4x256xf32> to vector<4xf32>
    %8 = vector.shape_cast %7 : vector<4xf32> to vector<4x1xf32>
    %9 = arith.addf %6, %8 : vector<4x1xf32>
    %cst_8 = arith.constant 3.906250e-03 : f32
    %10 = vector.broadcast %cst_8 : f32 to vector<4x1xf32>
    %11 = arith.mulf %9, %10 : vector<4x1xf32>
    %cst_9 = arith.constant dense<0.000000e+00> : vector<8x1xf32>
    %12 = tpu.matmul %4, %11, %cst_9 {dimension_numbers = #tpu.dot_dimension_numbers<[1], [0], [0], [1], [0, 0, 1, 1], [], []>} : vector<8x4xf32>, vector<4x1xf32>, vector<8x1xf32> -> vector<8x1xf32>
    %13 = vector.extract_strided_slice %12 {offsets = [0, 0], sizes = [4, 1], strides = [1, 1]} : vector<8x1xf32> to vector<4x1xf32>
    %14 = vector.extract_strided_slice %12 {offsets = [4, 0], sizes = [4, 1], strides = [1, 1]} : vector<8x1xf32> to vector<4x1xf32>
    %15 = arith.maximumf %13, %14 : vector<4x1xf32>
    %16 = arith.subf %13, %15 : vector<4x1xf32>
    %17 = math.exp %16 : vector<4x1xf32>
    %18 = arith.subf %14, %15 : vector<4x1xf32>
    %19 = math.exp %18 : vector<4x1xf32>
    %20 = arith.addf %17, %19 : vector<4x1xf32>
    %21 = tpu.reciprocal %20 {approx = true} : vector<4x1xf32> -> vector<4x1xf32>
    %22 = arith.mulf %17, %21 : vector<4x1xf32>
    %23 = arith.mulf %19, %21 : vector<4x1xf32>
    %24 = vector.broadcast %22 : vector<4x1xf32> to vector<4x256xf32>
    %25 = arith.mulf %24, %1 : vector<4x256xf32>
    %26 = vector.broadcast %23 : vector<4x1xf32> to vector<4x256xf32>
    %27 = arith.mulf %26, %3 : vector<4x256xf32>
    %28 = arith.addf %25, %27 : vector<4x256xf32>
    %c0_10 = arith.constant 0 : index
    %c0_11 = arith.constant 0 : index
    %c0_12 = arith.constant 0 : index
    %29 = vector.load %arg4[%c0_10, %c0_11, %c0_12] : memref<1x4x256xf32, #tpu.memory_space<vmem>>, vector<1x4x256xf32>
    %30 = vector.shape_cast %29 : vector<1x4x256xf32> to vector<4x256xf32>
    %31 = vector.shape_cast %28 : vector<4x256xf32> to vector<1x4x256xf32>
    tpu.vector_store %arg4[%c0_10, %c0_11, %c0_12], %31 {strides = array<i32>} : memref<1x4x256xf32, #tpu.memory_space<vmem>>, vector<1x4x256xf32>,
    return
  }
  func.func @transform_0(%arg0: i32) -> (i32, i32, i32) {
    %c0_i32 = arith.constant 0 : i32
    %c0_i32_0 = arith.constant 0 : i32
    %c0_i32_1 = arith.constant 0 : i32
    return %arg0, %c0_i32, %c0_i32_0 : i32, i32, i32
  }
  func.func @transform_1(%arg0: i32) -> (i32, i32, i32) {
    %c0_i32 = arith.constant 0 : i32
    %c0_i32_0 = arith.constant 0 : i32
    %c0_i32_1 = arith.constant 0 : i32
    return %arg0, %c0_i32, %c0_i32_0 : i32, i32, i32
  }
  func.func @transform_2(%arg0: i32) -> (i32, i32) {
    %c0_i32 = arith.constant 0 : i32
    %c0_i32_0 = arith.constant 0 : i32
    %c0_i32_1 = arith.constant 0 : i32
    return %c0_i32, %c0_i32_0 : i32, i32
  }
  func.func @transform_3(%arg0: i32) -> (i32, i32, i32) {
    %c0_i32 = arith.constant 0 : i32
    %c0_i32_0 = arith.constant 0 : i32
    %c0_i32_1 = arith.constant 0 : i32
    return %arg0, %c0_i32, %c0_i32_0 : i32, i32, i32
  }
}

</mosaic_0001>

<bundles_post_ra>
// kernel: tpu_custom_call.1
= control target key start
LH: loop header
LB: loop body
LE: loop exit
PB: predicated region body
PF: predicated region fallthrough
CT: control target
= control target key end

     0   :  { %8 = vsyncpa [#allocation3], 0  ;;  %s866_s0 = inlined_call_operand.hbm [shape: f32[2,4,256], index: 0, kind: input, shape index: {}]   ;;  %s867_s1 = inlined_call_operand.hbm [shape: f32[2,4,256], index: 1, kind: input, shape index: {}]   ;;  %s868_s2 = inlined_call_operand.vmem [shape: f32[8,4], index: 2, kind: input, shape index: {}]   ;;  %s869_s3 = inlined_call_operand.hbm [shape: f32[2,4,256], index: 3, kind: output, shape index: {}]  }
   0x1   :  { %10 = vsyncpa [#allocation3 + $0x1], 0 }
   0x2   :  { %11 = vsyncpa [#allocation6], 0 }
   0x3   :  { %13 = vsyncpa [#allocation6 + $0x1], 0 }
   0x4   :  { %14 = vsyncpa [#allocation4], 0 }
   0x5   :  { %16 = vsyncpa [#allocation4 + $0x1], 0  ;;  %s692_s12 = smov 0   ;;  %s694_s13 = smov 0  }
   0x6   :  { %s696_s14 = smov 0   ;;  %s698_s15 = smov 0  }
   0x7 LB: > { %s713_s16 = sadd.s32 4294967295, %s669_s15   ;;  %s456_s17 = sadd.s32 4294967294, %s669_s15   ;;  %s669_s15 = sphi %s698_s15, %s880_s15   ;;  %s665_s14 = sphi %s696_s14, %s879_s14   ;;  %s661_s13 = sphi %s694_s13, %s878_s13   ;;  %s657_s12 = sphi %s692_s12, %s877_s12  }
   0x8   : > { %s717_s18 = sadd.s32 1, %s669_s15   ;;  %s29_s19 = sadd.s32 1, %s665_s14 }
   0x9   : > { %s26_s20 = ssub.s32 %s669_s15, %s717_s18  ;;  %p36_p0 = scmp.ne.s32.totalorder %s665_s14, %s661_s13 }
   0xa   : > { %p27_p1 = scmp.eq.s32.totalorder %s26_s20, 0  ;;  %p37_p2 = scmp.eq.s32.totalorder %s669_s15, 0 }
   0xb   : > { %p42_p3 = scmp.ne.s32.totalorder %s661_s13, %s657_s12  ;;  %p43_p4 = scmp.eq.s32.totalorder %s713_s16, 0 }
   0xc   : > { %s729_s21 = scalar_select %p27_p1, %s665_s14, %s29_s19  }
   0xd   : > { %p731_p5 = por %p37_p2, %p36_p0  ;;  %p735_p6 = por %p43_p4, %p42_p3 }
   0xe   : > { %p113_p7 = scmp.eq.s32.totalorder %s713_s16, 1  ;;  %p119_p8 = scmp.eq.s32.totalorder %s456_s17, 1 }
   0xf   : > { %p496_p10 = scmp.lt.s32.totalorder %s669_s15, 2  ;;  %s751_s26 = sand.u32 1, %s665_s14  }
  0x10   : > { %p742_p11 = por %p113_p7, %p36_p0  ;;  %p746_p12 = por %p119_p8, %p42_p3 }
  0x11   : > { %s476_s27 = sshll.u32 %s669_s15, 3  ;;  %s459_s28 = sshll.u32 %s751_s26, 3 }
  0x12   : > { %s151_s4 = scalar_lea.hbm %s866_s0, %s476_s27  ;;  %s146_s6 = scalar_lea.vmem [#allocation2], %s459_s28 }
  0x13   : > { %s153_s5 = sshll.u32 %s151_s4, 4  ;;  %s155_s7 = sshll.u32 %s146_s6, 4  ;;  %s154_s5 = int_to_ptr.hbm [resolvable:$true] %s153_s5  ;;  %s156_s7 = int_to_ptr.vmem [resolvable:$true] %s155_s7 }
  0x14   : > { %p760_p13 = pnand %p496_p10, %p731_p5  ;;  %p465_p0 = scmp.ge.s32.totalorder %s669_s15, 1 }
  0x15   : > { %p180_p1 = scmp.lt.s32.totalorder %s669_s15, 3  ;;  %s143_s9 = scalar_lea.sflag [#allocation3], %s751_s26 }
  0x16   : > { %s539_s10 = sshra.s32 %s154_s5, 4  ;;  %p543_p3 = pneg %p760_p13  ;;  %s540_s10 = int_to_ptr.hbm [resolvable:$true] %s539_s10 }
  0x17   : > { %s541_s11 = scalar_lea.hbm %s540_s10, 8  ;;  %s546_s20 = scalar_lea.hbm %s866_s0, 16 }
  0x18   : > { %p542_p2 = scmp.ne.s32.totalorder %s540_s10, %s541_s11  ;;  %p547_p5 = scmp.lt.s32.totalorder %s540_s10, %s866_s0 }
  0x19   : > { %p548_p8 = scmp.lt.s32.totalorder %s546_s20, %s541_s11 }
  0x1a   : > { %p544_p4 = pnand %p543_p3, %p542_p2 }
  0x1b   : > { %p549_p10 = por %p548_p8, %p547_p5 }
  0x1c   : > { %p545_p7 = pneg %p544_p4 }
  0x1e   : > { %p550_p9 = pnand %p549_p10, %p545_p7 }
  0x20   : > { %553 = shalt.err (!%p550_p9)
}
  0x21   : > { %488 = dma.hbm_to_vmem [thread:$0]  (!%p760_p13), %s154_s5, 128, %s156_s7, %s143_s9  }
  0x22   : > { %p784_p2 = pnand %p465_p0, %p180_p1  ;;  %s171_s10 = scalar_lea.hbm %s867_s1, %s476_s27 }
  0x23   : > { %s173_s11 = sshll.u32 %s171_s10, 4  ;;  %s166_s17 = scalar_lea.vmem [#allocation5], %s459_s28  ;;  %s174_s11 = int_to_ptr.hbm [resolvable:$true] %s173_s11 }
  0x24   : > { %s175_s19 = sshll.u32 %s166_s17, 4  ;;  %s163_s20 = scalar_lea.sflag [#allocation6], %s751_s26  ;;  %s176_s19 = int_to_ptr.vmem [resolvable:$true] %s175_s19 }
  0x25   : > { %s569_s22 = sshra.s32 %s174_s11, 4  ;;  %s576_s9 = scalar_lea.hbm %s867_s1, 16  ;;  %s570_s22 = int_to_ptr.hbm [resolvable:$true] %s569_s22 }
  0x26   : > { %s571_s29 = scalar_lea.hbm %s570_s22, 8  ;;  %p577_p4 = scmp.lt.s32.totalorder %s570_s22, %s867_s1 }
  0x27   : > { %p572_p9 = scmp.ne.s32.totalorder %s570_s22, %s571_s29  ;;  %p578_p7 = scmp.lt.s32.totalorder %s576_s9, %s571_s29 }
  0x29   : > { %p574_p0 = pnand %p572_p9, %p543_p3  ;;  %p579_p5 = por %p578_p7, %p577_p4 }
  0x2b   : > { %p575_p1 = pneg %p574_p0 }
  0x2d   : > { %p580_p8 = pnand %p579_p5, %p575_p1 }
  0x2f   : > { %583 = shalt.err (!%p580_p8)
}
  0x30   : > { %491 = dma.hbm_to_vmem [thread:$0]  (!%p760_p13), %s174_s11, 128, %s176_s19, %s163_s20  }
  0x31   : > { %184 = sbr.rel (%p784_p2) target bundleno = 489 (0x1e9), region = 32  ;;  %s806_s26 = sand.u32 (!%p784_p2), 1, %s661_s13  }
  0x32   : > { %s809_s28 = sshll.u32 (!%p784_p2), %s806_s26, 3  ;;  %s187_s6 = scalar_lea.sflag (!%p784_p2), [#allocation3], %s806_s26 }
  0x33   : > { %s190_s10 = scalar_lea.vmem (!%p784_p2), [#allocation2], %s809_s28 }
  0x36   : > { %644 = dma.done.wait (%p735_p6), %s187_s6, 128  }
  0x37   : > { %646 = vsyncadd (%p735_p6), %s187_s6, 4294967168  ;;  %s197_s8 = scalar_lea.sflag [#allocation6], %s806_s26  ;;  %s200_s30 = scalar_lea.vmem [#allocation5], %s809_s28 }
  0x38   : > { %648 = dma.done.wait (%p735_p6), %s197_s8, 128  }
  0x39   : > { %650 = vsyncadd (%p735_p6), %s197_s8, 4294967168  ;;  %v229_v0 = vld [vmem:[%s190_s10] sm:$0xff]  ;;  %v230_v1 = vld [vmem:[%s200_s30] sm:$0xff]  ;;  %vm238_vm0 = vcmask 1043456   ;;  %vm257_vm1 = vcmask 31744   ;;  %v671_v17 = vmov 0  }
  0x3a   : > { %233 = vst [vmem:[#allocation1] ss:$2 sm:$0xff] %v229_v0  ;;  %v231_v16 = vld [vmem:[%s868_s2] sm:$0xff]  ;;  %531 = vset.pattern.permute.xlu1 %v671_v17  ;;  %532 = vset.pattern.permute.xlu0 %v671_v17  ;;  %s478_s17 = sshll.u32 %s713_s16, 3  ;;  %s228_s29 = scalar_lea.vmem [#allocation7], %s809_s28 }
  0x3b   : > { %s358_s22 = scalar_lea.hbm %s869_s3, %s478_s17  ;;  %s360_s5 = sshll.u32 %s228_s29, 4  ;;  %s361_s5 = int_to_ptr.vmem [resolvable:$true] %s360_s5 }
  0x3c   : > { %s362_s7 = sshll.u32 %s358_s22, 4  ;;  %s347_s16 = scalar_lea.sflag [#allocation4], %s806_s26  ;;  %s363_s7 = int_to_ptr.hbm [resolvable:$true] %s362_s7 }
  0x3d   : > { %s613_s9 = sshra.s32 %s363_s7, 4  ;;  %s619_s28 = scalar_lea.hbm %s869_s3, 16  ;;  %s614_s9 = int_to_ptr.hbm [resolvable:$true] %s613_s9 }
  0x3e   : > { %s615_s4 = scalar_lea.hbm %s614_s9, 8  ;;  %p620_p10 = scmp.lt.s32.totalorder %s614_s9, %s869_s3 }
  0x3f   : > { %p616_p6 = scmp.ne.s32.totalorder %s614_s9, %s615_s4  ;;  %p621_p2 = scmp.lt.s32.totalorder %s619_s28, %s615_s4 }
  0x41   : > { %v234_v2 = vld.sshfl [vmem:[#allocation1] sm:$0xff pattern:$0x75316420]  ;;  %v235_v3 = vld.sshfl [vmem:[#allocation1 + $0x8] sm:$0xff pattern:$0x75316420]  ;;  %p617_p13 = pnand %p616_p6, %p742_p11  ;;  %p622_p9 = por %p621_p2, %p620_p10 }
  0x42   : > { %v239_v4 = vsel %vm238_vm0, %v234_v2, 0.0  ;;  %v240_v5 = vsel %vm238_vm0, %v235_v3, 0.0  ;;  %245 = vst [vmem:[#allocation1] ss:$2 sm:$0xff] %v230_v1 }
  0x43   : > { %v241_v6 = vadd.f32 %v240_v5, %v239_v4  ;;  %p618_p3 = pneg %p617_p13 }
  0x45   : > { %242 = vadd.xlane.f32.xlu0 %v241_v6  ;;  %p623_p0 = pnand %p622_p9, %p618_p3 }
  0x49   : > { %v246_v7 = vld.sshfl [vmem:[#allocation1] sm:$0xff pattern:$0x75316420]  ;;  %v247_v8 = vld.sshfl [vmem:[#allocation1 + $0x8] sm:$0xff pattern:$0x75316420] }
  0x4a   : > { %v250_v9 = vsel %vm238_vm0, %v246_v7, 0.0  ;;  %v251_v10 = vsel %vm238_vm0, %v247_v8, 0.0  ;;  %312 = vst [vmem:[#allocation1] ss:$2 sm:$0xff] %v229_v0 }
  0x4b   : > { %v252_v11 = vadd.f32 %v251_v10, %v250_v9 }
  0x4d   : > { %253 = vadd.xlane.f32.xlu0 %v252_v11 }
  0x51   : > { %v313_v34 = vld.sshfl [vmem:[#allocation1] sm:$0xff pattern:$0x75316420]  ;;  %v314_v35 = vld.sshfl [vmem:[#allocation1 + $0x8] sm:$0xff pattern:$0x75316420] }
  0x52   : > { %325 = vst [vmem:[#allocation1 + $0x1] ss:$2 sm:$0xff] %v230_v1 }
  0x59   : > { %v327_v37 = vld.sshfl [vmem:[#allocation1 + $0x8] sm:$0xff pattern:$0x75316420]  ;;  %v326_v38 = vld.sshfl [vmem:[#allocation1] sm:$0xff pattern:$0x75316420] }
  0xb8   : > { %v243_v12 = vpop.xlane.xlu0 %242 }
  0xc0   : > { %v254_v13 = vpop.xlane.xlu0 %253 }
  0xc1   : > { %v255_v14 = vadd.f32 %v254_v13, %v243_v12 }
  0xc3   : > { %v256_v15 = vmul.f32 0.00390625, %v255_v14 }
  0xc5   : > { %469 = vmatpush.msk.msra.mxu0 %vm238_vm0, %v256_v15 }
  0xc6   : > { %470 = vmatmul.msk.f32.vlgmr.msra.gmra.mxu0 %vm257_vm1, %v231_v16 }
 0x143   : > { %v281_v18 = vpop.f32.mrf.mxu0 }
 0x144   : > { %v285_v19 = vrot.slane %v281_v18, 4 }
 0x146   : > { %v287_v20 = vmax.f32 %v281_v18, %v285_v19 }
 0x148   : > { %v288_v21 = vsub.f32 %v281_v18, %v287_v20  ;;  %v292_v22 = vrot.slane %v287_v20, 4 }
 0x14a   : > { %v294_v23 = vsub.f32 %v281_v18, %v292_v22  ;;  %v289_v24 = vmul.f32 1.442695, %v288_v21 }
 0x14c   : > { %v295_v25 = vmul.f32 1.442695, %v294_v23 }
 0x14e   : > { %533 = vpow2.f32 %v295_v25 }
 0x14f   : > { %535 = vpow2.f32 %v289_v24 }
 0x154   : > { %v534_v26 = vpop.eup %533 }
 0x155   : > { %v298_v27 = vrot.slane %v534_v26, 4  ;;  %v536_v28 = vpop.eup %535 }
 0x157   : > { %v300_v29 = vadd.f32 %v536_v28, %v298_v27 }
 0x159   : > { %537 = vrcp.f32 %v300_v29 }
 0x15f   : > { %v538_v30 = vpop.eup %537 }
 0x160   : > { %v304_v31 = vrot.slane %v538_v30, 4  ;;  %v302_v33 = vmul.f32 %v538_v30, %v536_v28 }
 0x162   : > { %v306_v32 = vmul.f32 %v534_v26, %v304_v31 }
 0x164   : > { %321 = vperm.xlu1 %531, %v306_v32  }
 0x16c   : > { %309 = vperm.xlu1 %531, %v302_v33  }
 0x1d6   : > { %v322_v36 = vpop.permute.xlu1 %321 }
 0x1d7   : > { %v331_v39 = vmul.f32 %v327_v37, %v322_v36  ;;  %v330_v40 = vmul.f32 %v326_v38, %v322_v36 }
 0x1d9   : > { %v335_v44 = vrot.slane %v331_v39, 4  ;;  %v334_v45 = vrot.slane %v330_v40, 4 }
 0x1de   : > { %v310_v41 = vpop.permute.xlu1 %309 }
 0x1df   : > { %v317_v42 = vmul.f32 %v313_v34, %v310_v41  ;;  %v318_v43 = vmul.f32 %v314_v35, %v310_v41 }
 0x1e1   : > { %v339_v46 = vadd.f32 %v335_v44, %v318_v43  ;;  %v338_v47 = vadd.f32 %v334_v45, %v317_v42 }
 0x1e3   : > { %v342_v48 = vrot.slane %v339_v46, 4 }
 0x1e5   : > { %v343_v49 = vsel %vm238_vm0, %v338_v47, %v342_v48 }
 0x1e6   : > { %345 = vst [vmem:[%s228_s29] sm:$0xff] %v343_v49 }
 0x1e7   : > { %626 = shalt.err (!%p623_p0)
}
 0x1e8   : > { %483 = dma.vmem_to_hbm [thread:$0]  (%p742_p11), %s361_s5, 128, %s363_s7, %s347_s16  }
 0x1e9 PF: > { %s374_s26 = sand.u32 1, %s657_s12   ;;  %p876_p1 = scmp.ge.s32.totalorder %s669_s15, 2 }
 0x1ea   : > { %s375_s30 = scalar_lea.sflag [#allocation4], %s374_s26 }
 0x1eb   : > { %p493_p4 = pnand %p876_p1, %p746_p12 }
 0x1ed   : > { %p494_p7 = pneg %p493_p4 }
 0x1ef   : > { %652 = dma.done.wait (%p494_p7), %s375_s30, 128  }
 0x1f0   : > { %654 = vsyncadd (%p494_p7), %s375_s30, 4294967168  ;;  %p19_p5 = scmp.ge.s32.totalorder %s717_s18, 4   ;;  %s877_s12 = smov %s661_s13 }
 0x1f1   : > { %s878_s13 = smov %s665_s14  ;;  %s879_s14 = smov %s729_s21 }
 0x1f2   : > { %s880_s15 = smov %s717_s18  ;;  %21 = sbr.rel (!%p19_p5) target bundleno = 7 (0x7), region = 91 }
 0x1f7   :  { %381 = vsyncpa [#allocation3], 1 }
 0x1f8   :  { %383 = vsyncpa [#allocation3 + $0x1], 1 }
 0x1f9   :  { %384 = vsyncpa [#allocation6], 1 }
 0x1fa   :  { %386 = vsyncpa [#allocation6 + $0x1], 1 }
 0x1fb   :  { %387 = vsyncpa [#allocation4], 1 }
 0x1fc   :  { %389 = vsyncpa [#allocation4 + $0x1], 1 }

</bundles_post_ra>
